<compile_context>
chip_gen: v7x
topology: tpu7x:2x2x1
jax: 0.10.0
libtpu: 0.0.40
codegen_flags: <defaults>
</compile_context>

<pallas_src>
import functools
import math

import jax
import jax.numpy as jnp
import numpy as np
from jax.experimental import pallas as pl
from jax.experimental.pallas import tpu as pltpu

LANE = 128


def _round_up(x, m):
    return (x + m - 1) // m * m


def _pad_dim(d):
    # 128-lane alignment; widths > 128 are rounded to 256 multiples so both halves
    # of the 256x256 MXU (v6e/v7x) are fed. 128 matches v5e's 128x128 MXU tiles.
    return _round_up(d, 256) if d > 128 else _round_up(d, 128)


# ----------------------------------------------------------------------------
# Fused Pallas kernel: whole MLP (hidden Linear+ReLU layers + head) per batch tile
# ----------------------------------------------------------------------------
def _fused_mlp_kernel(x_ref, *refs, n_hidden: int, d_in: int, d_out: int):
    """refs = [w1, b1, ..., w_nh, b_nh, w_head, b_head, o_ref, xpad_scratch]."""
    o_ref = refs[-2]
    xpad_ref = refs[-1]
    wb = refs[:-2]

    # Stage the narrow (tile_b, d_in) input tile into a lane-padded VMEM scratch.
    # Zeroed every step (not just on program_id == 0) so the pad lanes are exact
    # zeros on BOTH TensorCores when the batch grid is split under "parallel".
    xpad_ref[...] = jnp.zeros_like(xpad_ref)
    xpad_ref[:, 0:d_in] = x_ref[...]
    h = xpad_ref[...].astype(jnp.bfloat16)          # bf16 into the MXU

    for i in range(n_hidden):                       # statically unrolled, n small
        w = wb[2 * i][...]                          # (fin_pad, fout_pad) bf16
        b = wb[2 * i + 1][...]                      # (1, fout_pad) f32
        y = jnp.dot(h, w, preferred_element_type=jnp.float32) + b
        h = jnp.maximum(y, 0.0).astype(jnp.bfloat16)

    w_h = wb[2 * n_hidden][...]                     # (fin_pad, d_out_pad) bf16
    b_h = wb[2 * n_hidden + 1][...]                 # (1, d_out_pad) f32
    out = jnp.dot(h, w_h, preferred_element_type=jnp.float32) + b_h
    # Only the first d_out columns are real; narrow before the HBM store so the
    # output stream is d_out wide (4 B/row for d_out=1) instead of 128 lanes.
    o_ref[...] = out[:, 0:d_out].astype(o_ref.dtype)


def fused_mlp(x, layers, head_w, head_b, *, tile_b, d_out):
    """x: (B_pad, d_in) f32 (unpadded feature dim) -> (B_pad, d_out) f32."""
    B_pad, d_in = x.shape
    d_in_pad = layers[0][0].shape[0] if layers else head_w.shape[0]
    d_out_pad = head_w.shape[1]
    n_hidden = len(layers)

    const_map = lambda i: (0, 0)                    # weights/biases resident
    in_specs = [pl.BlockSpec((tile_b, d_in), lambda i: (i, 0))]
    args = [x]
    wb_bytes = 0
    for (w, b) in list(layers) + [(head_w, head_b)]:
        in_specs.append(pl.BlockSpec(w.shape, const_map))
        in_specs.append(pl.BlockSpec(b.shape, const_map))
        args.extend((w, b))
        wb_bytes += w.size * w.dtype.itemsize + b.size * b.dtype.itemsize

    # Explicit VMEM budget: double-buffered x/out tiles + (double-buffered) resident
    # weights + input-staging scratch + a few f32 intermediates, with 2x headroom.
    max_hidden = max((w.shape[1] for w, _ in layers), default=d_out_pad)
    inter_bytes = 4 * tile_b * max(max_hidden, d_out_pad) * 4
    need = (2 * tile_b * d_in * 4 + 2 * tile_b * d_out * 4
            + 2 * wb_bytes + tile_b * d_in_pad * 4 + inter_bytes)
    vmem_limit = int(min(48 * 1024 * 1024, max(32 * 1024 * 1024, 2 * need)))

    kernel = functools.partial(
        _fused_mlp_kernel, n_hidden=n_hidden, d_in=d_in, d_out=d_out)

    return pl.pallas_call(
        kernel,
        out_shape=jax.ShapeDtypeStruct((B_pad, d_out), jnp.float32),
        grid=(B_pad // tile_b,),
        in_specs=in_specs,
        out_specs=pl.BlockSpec((tile_b, d_out), lambda i: (i, 0)),
        scratch_shapes=[pltpu.VMEM((tile_b, d_in_pad), jnp.float32)],
        compiler_params=pltpu.CompilerParams(
            dimension_semantics=("parallel",),      # 2 TCs on v7x; no-op on v5e/v6e
            vmem_limit_bytes=vmem_limit,
        ),
    )(*args)


# ----------------------------------------------------------------------------
# Parameter construction (deterministic, mirrors the PyTorch module shapes)
# ----------------------------------------------------------------------------
def kaiming_uniform(key, shape, fan_in, a=math.sqrt(5)):
    gain = math.sqrt(2.0 / (1.0 + a * a))
    bound = gain * math.sqrt(3.0 / fan_in)
    return jax.random.uniform(key, shape, jnp.float32, -bound, bound)


def build_params(key, *, d_num, categories, d_embedding, n_layers, d_layers, d_out):
    params = {}
    keys = jax.random.split(key, 2 * (n_layers + 1) + 1)
    ki = 0

    # Embedding table: (sum(categories), d_embedding), kaiming_uniform a=sqrt(5)
    n_emb = sum(categories)
    params["emb"] = kaiming_uniform(keys[ki], (n_emb, d_embedding), fan_in=d_embedding)
    ki += 1
    params["category_offsets"] = jnp.asarray(
        np.cumsum([0] + list(categories[:-1])), dtype=jnp.int32)

    d_in = d_num + len(categories) * d_embedding
    dims = [d_in] + [d_layers] * n_layers

    layers = []
    for i in range(n_layers):
        fin, fout = dims[i], dims[i + 1]
        w = kaiming_uniform(keys[ki], (fin, fout), fan_in=fin)  # stored (Din, Dout)
        ki += 1
        bound = 1.0 / math.sqrt(fin)
        b = jax.random.uniform(keys[ki], (fout,), jnp.float32, -bound, bound)
        ki += 1
        layers.append((w, b))
    params["layers"] = layers

    fin = dims[-1]
    params["head_w"] = kaiming_uniform(keys[ki], (fin, d_out), fan_in=fin)
    ki += 1
    bound = 1.0 / math.sqrt(fin)
    params["head_b"] = jax.random.uniform(keys[ki], (d_out,), jnp.float32, -bound, bound)
    return params


def _pad2d(a, rows, cols):
    return jnp.pad(a, ((0, rows - a.shape[0]), (0, cols - a.shape[1])))


def pack_kernel_params(params):
    """Zero-pad feature dims (128, or 256 when >128), cast weights to bf16.

    Zero padding keeps the math exact: padded input lanes are zero and padded
    weight rows/cols/biases are zero, and ReLU(0) = 0.
    """
    padded_layers = []
    for (w, b) in params["layers"]:
        fin_p, fout_p = _pad_dim(w.shape[0]), _pad_dim(w.shape[1])
        w_p = _pad2d(w, fin_p, fout_p).astype(jnp.bfloat16)
        b_p = jnp.pad(b, (0, fout_p - b.shape[0])).reshape(1, fout_p).astype(jnp.float32)
        padded_layers.append((w_p, b_p))

    hw, hb = params["head_w"], params["head_b"]
    fin_p, fout_p = _pad_dim(hw.shape[0]), _pad_dim(hw.shape[1])
    hw_p = _pad2d(hw, fin_p, fout_p).astype(jnp.bfloat16)
    hb_p = jnp.pad(hb, (0, fout_p - hb.shape[0])).reshape(1, fout_p).astype(jnp.float32)
    return padded_layers, hw_p, hb_p


# ----------------------------------------------------------------------------
# Forward pass (mirrors MLP.forward, eval mode). jit-safe (static column indices).
# ----------------------------------------------------------------------------
def mlp_forward(params, kernel_params, x, *, num_idx, cat_idx, d_out, regression):
    padded_layers, head_w, head_b = kernel_params

    # Feature split with static integer column indices (jit-safe, unlike bool masks).
    x_num = x[:, num_idx].astype(jnp.float32)
    x_cat = x[:, cat_idx].astype(jnp.int32)

    # Embedding gather + concat (glue, plain JAX; fuses with the batch pad under jit).
    idx = x_cat + params["category_offsets"][None, :]
    emb = jnp.take(params["emb"], idx, axis=0).reshape(x_cat.shape[0], -1)
    h = jnp.concatenate([x_num, emb], axis=-1)          # (B, d_in) f32, no lane pad

    B = h.shape[0]
    # tile_b: multiple of 16 (packed-bf16 sublane tile), >=2 grid steps when B
    # allows (so "parallel" splits across v7x's two TensorCores), <=512 rows/step.
    tile_b = min(512, _round_up(pl.cdiv(B, 2), 16))
    B_pad = _round_up(B, tile_b)
    h = jnp.pad(h, ((0, B_pad - B), (0, 0)))            # batch pad only

    out = fused_mlp(h, padded_layers, head_w, head_b, tile_b=tile_b, d_out=d_out)
    out = out[:B]                                       # (B, d_out), nothing padded
    if not regression:
        out = jnp.squeeze(out, axis=-1)
    return out


# Pure-JAX reference (f32) for correctness checking.
def mlp_reference(params, x, *, num_idx, cat_idx, regression):
    x_num = x[:, num_idx].astype(jnp.float32)
    x_cat = x[:, cat_idx].astype(jnp.int32)
    idx = x_cat + params["category_offsets"][None, :]
    emb = jnp.take(params["emb"], idx, axis=0).reshape(x_cat.shape[0], -1)
    h = jnp.concatenate([x_num, emb], axis=-1)
    for (w, b) in params["layers"]:
        h = jnp.maximum(h @ w + b, 0.0)
    out = h @ params["head_w"] + params["head_b"]
    if not regression:
        out = jnp.squeeze(out, axis=-1)
    return out


# ----------------------------------------------------------------------------
# Main
# ----------------------------------------------------------------------------
if __name__ == "__main__":
    key = jax.random.PRNGKey(0)

    # Small config consistent with the module.
    batch = 8
    d_num = 6                  # numeric features
    categories = [3, 5]        # two categorical columns
    d_embedding = 4
    n_layers = 2
    d_layers = 32
    d_out = 1
    regression = False         # -> output squeezed to shape (batch,)

    categorical_indicator = np.array([False] * d_num + [True] * len(categories))
    num_idx = np.flatnonzero(~categorical_indicator)
    cat_idx = np.flatnonzero(categorical_indicator)

    pkey, xkey, ckey = jax.random.split(key, 3)
    params = build_params(
        pkey, d_num=d_num, categories=categories, d_embedding=d_embedding,
        n_layers=n_layers, d_layers=d_layers, d_out=d_out)
    kernel_params = pack_kernel_params(params)

    # Raw input: numeric columns ~ N(0,1), categorical columns are valid ids.
    x_num = jax.random.normal(xkey, (batch, d_num), dtype=jnp.float32)
    cat_cols = []
    ckeys = jax.random.split(ckey, len(categories))
    for j, card in enumerate(categories):
        cat_cols.append(
            jax.random.randint(ckeys[j], (batch, 1), 0, card).astype(jnp.float32))
    x = jnp.concatenate([x_num] + cat_cols, axis=-1)    # (batch, d_num + n_cat)

    fwd = jax.jit(functools.partial(
        mlp_forward, num_idx=num_idx, cat_idx=cat_idx,
        d_out=d_out, regression=regression))

    out = jax.block_until_ready(fwd(params, kernel_params, x))
    ref = jax.block_until_ready(
        mlp_reference(params, x, num_idx=num_idx, cat_idx=cat_idx,
                      regression=regression))

    assert out.shape == (batch,), out.shape
    assert jnp.all(jnp.isfinite(out))
    np.testing.assert_allclose(np.asarray(out), np.asarray(ref), rtol=5e-2, atol=5e-2)
    print("KERNEL_OK")
</pallas_src>

<mosaic_0001>
module attributes {stable_mosaic.version = 11 : i64} {
  func.func @_fused_mlp_kernel(%arg0: i32, %arg1: memref<16x14xf32, #tpu.memory_space<vmem>>, %arg2: memref<128x128xbf16, #tpu.memory_space<vmem>>, %arg3: memref<1x128xf32, #tpu.memory_space<vmem>>, %arg4: memref<128x128xbf16, #tpu.memory_space<vmem>>, %arg5: memref<1x128xf32, #tpu.memory_space<vmem>>, %arg6: memref<128x128xbf16, #tpu.memory_space<vmem>>, %arg7: memref<1x128xf32, #tpu.memory_space<vmem>>, %arg8: memref<16x1xf32, #tpu.memory_space<vmem>>, %arg9: memref<16x128xf32, #tpu.memory_space<vmem>>) attributes {dimension_semantics = [#tpu.dimension_semantics<parallel>], iteration_bounds = array<i64: 1>, scalar_prefetch = 0 : i64, scratch_operands = 1 : i64, tpu.core_type = #tpu.core_type<tc>, window_params = [{transform_indices = @transform_0, window_bounds = array<i64: 16, 14>}, {pipeline_mode = #tpu.pipeline_mode<synchronous>, transform_indices = @transform_1, window_bounds = array<i64: 128, 128>}, {pipeline_mode = #tpu.pipeline_mode<synchronous>, transform_indices = @transform_2, window_bounds = array<i64: 1, 128>}, {pipeline_mode = #tpu.pipeline_mode<synchronous>, transform_indices = @transform_3, window_bounds = array<i64: 128, 128>}, {pipeline_mode = #tpu.pipeline_mode<synchronous>, transform_indices = @transform_4, window_bounds = array<i64: 1, 128>}, {pipeline_mode = #tpu.pipeline_mode<synchronous>, transform_indices = @transform_5, window_bounds = array<i64: 128, 128>}, {pipeline_mode = #tpu.pipeline_mode<synchronous>, transform_indices = @transform_6, window_bounds = array<i64: 1, 128>}, {transform_indices = @transform_7, window_bounds = array<i64: 16, 1>}]} {
    %cst = arith.constant 0.000000e+00 : f32
    %0 = vector.broadcast %cst : f32 to vector<16x128xf32>
    %c0 = arith.constant 0 : index
    %c0_0 = arith.constant 0 : index
    %1 = vector.load %arg9[%c0, %c0_0] : memref<16x128xf32, #tpu.memory_space<vmem>>, vector<16x128xf32>
    tpu.vector_store %arg9[%c0, %c0_0], %0 {strides = array<i32>} : memref<16x128xf32, #tpu.memory_space<vmem>>, vector<16x128xf32>,
    %c0_1 = arith.constant 0 : index
    %c0_2 = arith.constant 0 : index
    %2 = vector.load %arg1[%c0_1, %c0_2] : memref<16x14xf32, #tpu.memory_space<vmem>>, vector<16x14xf32>
    %c0_3 = arith.constant 0 : index
    %c0_4 = arith.constant 0 : index
    %3 = vector.load %arg9[%c0_3, %c0_4] : memref<16x128xf32, #tpu.memory_space<vmem>>, vector<16x14xf32>
    tpu.vector_store %arg9[%c0_3, %c0_4], %2 {strides = array<i32>} : memref<16x128xf32, #tpu.memory_space<vmem>>, vector<16x14xf32>,
    %c0_5 = arith.constant 0 : index
    %c0_6 = arith.constant 0 : index
    %4 = vector.load %arg9[%c0_5, %c0_6] : memref<16x128xf32, #tpu.memory_space<vmem>>, vector<16x128xf32>
    %5 = arith.truncf %4 : vector<16x128xf32> to vector<16x128xbf16>
    %c0_7 = arith.constant 0 : index
    %c0_8 = arith.constant 0 : index
    %6 = vector.load %arg2[%c0_7, %c0_8] : memref<128x128xbf16, #tpu.memory_space<vmem>>, vector<128x128xbf16>
    %c0_9 = arith.constant 0 : index
    %c0_10 = arith.constant 0 : index
    %7 = vector.load %arg3[%c0_9, %c0_10] : memref<1x128xf32, #tpu.memory_space<vmem>>, vector<1x128xf32>
    %cst_11 = arith.constant dense<0.000000e+00> : vector<16x128xf32>
    %8 = tpu.matmul %5, %6, %cst_11 {dimension_numbers = #tpu.dot_dimension_numbers<[1], [0], [0], [1], [0, 0, 1, 1], [], []>} : vector<16x128xbf16>, vector<128x128xbf16>, vector<16x128xf32> -> vector<16x128xf32>
    %9 = vector.broadcast %7 : vector<1x128xf32> to vector<16x128xf32>
    %10 = arith.addf %8, %9 : vector<16x128xf32>
    %cst_12 = arith.constant 0.000000e+00 : f32
    %11 = vector.broadcast %cst_12 : f32 to vector<16x128xf32>
    %12 = arith.maximumf %10, %11 : vector<16x128xf32>
    %13 = arith.truncf %12 : vector<16x128xf32> to vector<16x128xbf16>
    %c0_13 = arith.constant 0 : index
    %c0_14 = arith.constant 0 : index
    %14 = vector.load %arg4[%c0_13, %c0_14] : memref<128x128xbf16, #tpu.memory_space<vmem>>, vector<128x128xbf16>
    %c0_15 = arith.constant 0 : index
    %c0_16 = arith.constant 0 : index
    %15 = vector.load %arg5[%c0_15, %c0_16] : memref<1x128xf32, #tpu.memory_space<vmem>>, vector<1x128xf32>
    %cst_17 = arith.constant dense<0.000000e+00> : vector<16x128xf32>
    %16 = tpu.matmul %13, %14, %cst_17 {dimension_numbers = #tpu.dot_dimension_numbers<[1], [0], [0], [1], [0, 0, 1, 1], [], []>} : vector<16x128xbf16>, vector<128x128xbf16>, vector<16x128xf32> -> vector<16x128xf32>
    %17 = vector.broadcast %15 : vector<1x128xf32> to vector<16x128xf32>
    %18 = arith.addf %16, %17 : vector<16x128xf32>
    %cst_18 = arith.constant 0.000000e+00 : f32
    %19 = vector.broadcast %cst_18 : f32 to vector<16x128xf32>
    %20 = arith.maximumf %18, %19 : vector<16x128xf32>
    %21 = arith.truncf %20 : vector<16x128xf32> to vector<16x128xbf16>
    %c0_19 = arith.constant 0 : index
    %c0_20 = arith.constant 0 : index
    %22 = vector.load %arg6[%c0_19, %c0_20] : memref<128x128xbf16, #tpu.memory_space<vmem>>, vector<128x128xbf16>
    %c0_21 = arith.constant 0 : index
    %c0_22 = arith.constant 0 : index
    %23 = vector.load %arg7[%c0_21, %c0_22] : memref<1x128xf32, #tpu.memory_space<vmem>>, vector<1x128xf32>
    %cst_23 = arith.constant dense<0.000000e+00> : vector<16x128xf32>
    %24 = tpu.matmul %21, %22, %cst_23 {dimension_numbers = #tpu.dot_dimension_numbers<[1], [0], [0], [1], [0, 0, 1, 1], [], []>} : vector<16x128xbf16>, vector<128x128xbf16>, vector<16x128xf32> -> vector<16x128xf32>
    %25 = vector.broadcast %23 : vector<1x128xf32> to vector<16x128xf32>
    %26 = arith.addf %24, %25 : vector<16x128xf32>
    %27 = vector.extract_strided_slice %26 {offsets = [0, 0], sizes = [16, 1], strides = [1, 1]} : vector<16x128xf32> to vector<16x1xf32>
    %c0_24 = arith.constant 0 : index
    %c0_25 = arith.constant 0 : index
    %28 = vector.load %arg8[%c0_24, %c0_25] : memref<16x1xf32, #tpu.memory_space<vmem>>, vector<16x1xf32>
    tpu.vector_store %arg8[%c0_24, %c0_25], %27 {strides = array<i32>} : memref<16x1xf32, #tpu.memory_space<vmem>>, vector<16x1xf32>,
    return
  }
  func.func @transform_0(%arg0: i32) -> (i32, i32) {
    %c0_i32 = arith.constant 0 : i32
    %c0_i32_0 = arith.constant 0 : i32
    return %arg0, %c0_i32 : i32, i32
  }
  func.func @transform_1(%arg0: i32) -> (i32, i32) {
    %c0_i32 = arith.constant 0 : i32
    %c0_i32_0 = arith.constant 0 : i32
    %c0_i32_1 = arith.constant 0 : i32
    return %c0_i32, %c0_i32_0 : i32, i32
  }
  func.func @transform_2(%arg0: i32) -> (i32, i32) {
    %c0_i32 = arith.constant 0 : i32
    %c0_i32_0 = arith.constant 0 : i32
    %c0_i32_1 = arith.constant 0 : i32
    return %c0_i32, %c0_i32_0 : i32, i32
  }
  func.func @transform_3(%arg0: i32) -> (i32, i32) {
    %c0_i32 = arith.constant 0 : i32
    %c0_i32_0 = arith.constant 0 : i32
    %c0_i32_1 = arith.constant 0 : i32
    return %c0_i32, %c0_i32_0 : i32, i32
  }
  func.func @transform_4(%arg0: i32) -> (i32, i32) {
    %c0_i32 = arith.constant 0 : i32
    %c0_i32_0 = arith.constant 0 : i32
    %c0_i32_1 = arith.constant 0 : i32
    return %c0_i32, %c0_i32_0 : i32, i32
  }
  func.func @transform_5(%arg0: i32) -> (i32, i32) {
    %c0_i32 = arith.constant 0 : i32
    %c0_i32_0 = arith.constant 0 : i32
    %c0_i32_1 = arith.constant 0 : i32
    return %c0_i32, %c0_i32_0 : i32, i32
  }
  func.func @transform_6(%arg0: i32) -> (i32, i32) {
    %c0_i32 = arith.constant 0 : i32
    %c0_i32_0 = arith.constant 0 : i32
    %c0_i32_1 = arith.constant 0 : i32
    return %c0_i32, %c0_i32_0 : i32, i32
  }
  func.func @transform_7(%arg0: i32) -> (i32, i32) {
    %c0_i32 = arith.constant 0 : i32
    %c0_i32_0 = arith.constant 0 : i32
    return %arg0, %c0_i32 : i32, i32
  }
}

</mosaic_0001>

<bundles_post_ra>
// kernel: mlp_forward.1
= control target key start
LH: loop header
LB: loop body
LE: loop exit
PB: predicated region body
PF: predicated region fallthrough
CT: control target
= control target key end

     0   :  { %v526_v0 = vmov 0.0   ;;  %vm527_vm0 = vmmov 0   ;;  %vm31_vm1 = vcmask 113664   ;;  %vm379_vm2 = vcmask 7168   ;;  %s693_s1 = inlined_call_operand.vmem [shape: bf16[128,128], index: 1, kind: input, shape index: {}]   ;;  %s694_s0 = inlined_call_operand.vmem [shape: f32[16,14], index: 0, kind: input, shape index: {}]   ;;  %s695_s3 = inlined_call_operand.vmem [shape: bf16[128,128], index: 3, kind: input, shape index: {}]   ;;  %s696_s5 = inlined_call_operand.vmem [shape: bf16[128,128], index: 5, kind: input, shape index: {}]   ;;  %s697_s2 = inlined_call_operand.vmem [shape: f32[1,128], index: 2, kind: input, shape index: {}]   ;;  %s698_s4 = inlined_call_operand.vmem [shape: f32[1,128], index: 4, kind: input, shape index: {}]   ;;  %s699_s6 = inlined_call_operand.vmem [shape: f32[1,128], index: 6, kind: input, shape index: {}]   ;;  %s700_s7 = inlined_call_operand.vmem [shape: f32[16,1], index: 7, kind: output, shape index: {}]  }
   0x1   :  { %440 = vmatprep.subr.bf16.mxu0 %v526_v0  ;;  %27 = vst [vmem:[#allocation2] sm:$0xff] %v526_v0  ;;  %28 = vst [vmem:[#allocation2 + $0x8] sm:$0xff] %v526_v0  ;;  %v502_v1 = vld [vmem:[%s693_s1] sm:$0xff]   ;;  %456 = vmatprep.mubr.msk.bf16.mxu0 %vm527_vm0, %v526_v0  ;;  %v503_v2 = vld [vmem:[%s693_s1 + $0x8] sm:$0xff]  }
   0x2   :  { %460 = vmatprep.subr.bf16.mxu1 %v526_v0  ;;  %476 = vmatprep.mubr.msk.bf16.mxu1 %vm527_vm0, %v526_v0  ;;  %v504_v3 = vld [vmem:[%s693_s1 + $0x10] sm:$0xff]   ;;  %v29_v4 = vld [vmem:[%s694_s0] sm:$0xff]  ;;  %v30_v5 = vld [vmem:[%s694_s0 + $0x8] sm:$0xff] }
   0x3   :  { %441 = vmatpush3.bf16.msra.mxu0 %v502_v1  ;;  %32 = vst.msk [vmem:[#allocation2] sm:$0xff] %vm31_vm1, %v29_v4  ;;  %33 = vst.msk [vmem:[#allocation2 + $0x8] sm:$0xff] %vm31_vm1, %v30_v5  ;;  %v510_v6 = vld [vmem:[%s695_s3] sm:$0xff]   ;;  %v505_v7 = vld [vmem:[%s693_s1 + $0x18] sm:$0xff]  }
   0x4   :  { %442 = vmatprep.subr.bf16.mxu0 %v526_v0  ;;  %461 = vmatpush3.bf16.msra.mxu1 %v510_v6  ;;  %v511_v8 = vld [vmem:[%s695_s3 + $0x8] sm:$0xff]   ;;  %v506_v9 = vld [vmem:[%s693_s1 + $0x20] sm:$0xff]   ;;  %v512_v10 = vld [vmem:[%s695_s3 + $0x10] sm:$0xff]  }
   0x5   :  { %462 = vmatprep.subr.bf16.mxu1 %v526_v0  ;;  %v507_v11 = vld [vmem:[%s693_s1 + $0x28] sm:$0xff]   ;;  %v513_v12 = vld [vmem:[%s695_s3 + $0x18] sm:$0xff]   ;;  %v508_v13 = vld [vmem:[%s693_s1 + $0x30] sm:$0xff]  }
   0x6   :  { %v514_v14 = vld [vmem:[%s695_s3 + $0x20] sm:$0xff]   ;;  %v509_v15 = vld [vmem:[%s693_s1 + $0x38] sm:$0xff]   ;;  %v515_v18 = vld [vmem:[%s695_s3 + $0x28] sm:$0xff]  }
   0x7   :  { %443 = vmatpush3.bf16.msra.mxu0 %v503_v2  ;;  %v516_v20 = vld [vmem:[%s695_s3 + $0x30] sm:$0xff]   ;;  %v517_v21 = vld [vmem:[%s695_s3 + $0x38] sm:$0xff]   ;;  %v518_v22 = vld [vmem:[%s696_s5] sm:$0xff]  }
   0x8   :  { %444 = vmatprep.subr.bf16.mxu0 %v526_v0  ;;  %463 = vmatpush3.bf16.msra.mxu1 %v511_v8  ;;  %v519_v23 = vld [vmem:[%s696_s5 + $0x8] sm:$0xff]   ;;  %v520_v24 = vld [vmem:[%s696_s5 + $0x10] sm:$0xff]   ;;  %v521_v25 = vld [vmem:[%s696_s5 + $0x18] sm:$0xff]  }
   0x9   :  { %464 = vmatprep.subr.bf16.mxu1 %v526_v0  ;;  %v522_v26 = vld [vmem:[%s696_s5 + $0x20] sm:$0xff]   ;;  %v523_v27 = vld [vmem:[%s696_s5 + $0x28] sm:$0xff]   ;;  %v524_v38 = vld [vmem:[%s696_s5 + $0x30] sm:$0xff]  }
   0xa   :  { %v34_v16 = vld [vmem:[#allocation2] sm:$0xff]  ;;  %v35_v17 = vld [vmem:[#allocation2 + $0x8] sm:$0xff]  ;;  %v525_v39 = vld [vmem:[%s696_s5 + $0x38] sm:$0xff]  }
   0xb   :  { %445 = vmatpush3.bf16.msra.mxu0 %v504_v3  ;;  %v36_v19 = vpack.c.bf16 %v35_v17, %v34_v16  ;;  %v386_v28 = vld [vmem:[%s697_s2] ss:$0 sm:$0xff] }
   0xc   :  { %446 = vmatprep.subr.bf16.mxu0 %v526_v0  ;;  %465 = vmatpush3.bf16.msra.mxu1 %v512_v10  ;;  %v395_v40 = vld [vmem:[%s698_s4] ss:$0 sm:$0xff] }
   0xd   :  { %466 = vmatprep.subr.bf16.mxu1 %v526_v0  ;;  %v404_v50 = vld [vmem:[%s699_s6] ss:$0 sm:$0xff] }
   0xf   :  { %447 = vmatpush3.bf16.msra.mxu0 %v505_v7 }
  0x10   :  { %448 = vmatprep.subr.bf16.mxu0 %v526_v0  ;;  %467 = vmatpush3.bf16.msra.mxu1 %v513_v12 }
  0x11   :  { %468 = vmatprep.subr.bf16.mxu1 %v526_v0 }
  0x13   :  { %449 = vmatpush3.bf16.msra.mxu0 %v506_v9 }
  0x14   :  { %450 = vmatprep.subr.bf16.mxu0 %v526_v0  ;;  %469 = vmatpush3.bf16.msra.mxu1 %v514_v14 }
  0x15   :  { %470 = vmatprep.subr.bf16.mxu1 %v526_v0 }
  0x17   :  { %451 = vmatpush3.bf16.msra.mxu0 %v507_v11 }
  0x18   :  { %452 = vmatprep.subr.bf16.mxu0 %v526_v0  ;;  %471 = vmatpush3.bf16.msra.mxu1 %v515_v18 }
  0x19   :  { %472 = vmatprep.subr.bf16.mxu1 %v526_v0 }
  0x1b   :  { %453 = vmatpush3.bf16.msra.mxu0 %v508_v13 }
  0x1c   :  { %454 = vmatprep.subr.bf16.mxu0 %v526_v0  ;;  %473 = vmatpush3.bf16.msra.mxu1 %v516_v20 }
  0x1d   :  { %474 = vmatprep.subr.bf16.mxu1 %v526_v0 }
  0x1f   :  { %455 = vmatpush3.bf16.msra.mxu0 %v509_v15 }
  0x20   :  { %480 = vmatprep.subr.bf16.mxu0 %v526_v0  ;;  %475 = vmatpush3.bf16.msra.mxu1 %v517_v21 }
  0x22   :  { %457 = vmatmul.mubr.bf16.vlgmr.msra.gmra.mrb[0].mxu0 %v36_v19 }
  0x23   :  { %496 = vmatprep.mubr.msk.bf16.mxu0 %vm527_vm0, %v526_v0  ;;  %481 = vmatpush3.bf16.msra.mxu0 %v518_v22 }
  0x24   :  { %482 = vmatprep.subr.bf16.mxu0 %v526_v0 }
  0x27   :  { %483 = vmatpush3.bf16.msra.mxu0 %v519_v23 }
  0x28   :  { %484 = vmatprep.subr.bf16.mxu0 %v526_v0 }
  0x2b   :  { %485 = vmatpush3.bf16.msra.mxu0 %v520_v24 }
  0x2c   :  { %486 = vmatprep.subr.bf16.mxu0 %v526_v0 }
  0x2f   :  { %487 = vmatpush3.bf16.msra.mxu0 %v521_v25 }
  0x30   :  { %488 = vmatprep.subr.bf16.mxu0 %v526_v0 }
  0x33   :  { %489 = vmatpush3.bf16.msra.mxu0 %v522_v26 }
  0x34   :  { %490 = vmatprep.subr.bf16.mxu0 %v526_v0 }
  0x37   :  { %491 = vmatpush3.bf16.msra.mxu0 %v523_v27 }
  0x38   :  { %492 = vmatprep.subr.bf16.mxu0 %v526_v0 }
  0x3b   :  { %493 = vmatpush3.bf16.msra.mxu0 %v524_v38 }
  0x3c   :  { %494 = vmatprep.subr.bf16.mxu0 %v526_v0 }
  0x3f   :  { %495 = vmatpush3.bf16.msra.mxu0 %v525_v39 }
  0xf5   :  { %v142_v29 = vpop.f32.mrb[0].mxu0 }
  0xf6   :  { %v143_v30 = vadd.f32 %v386_v28, %v142_v29  ;;  %v458_v31 = vpop.f32.mrb[1].mxu0 }
  0xf7   :  { %v145_v32 = vpop.f32.mrb[2].mxu0 }
  0xf8   :  { %v146_v33 = vadd.f32 %v386_v28, %v145_v32  ;;  %v459_v34 = vpop.f32.mrb[3].mxu0  ;;  %v149_v35 = vmax.f32 %v143_v30, 0.0 }
  0xfa   :  { %v150_v36 = vmax.f32 %v146_v33, 0.0 }
  0xfc   :  { %v151_v37 = vpack.c.bf16 %v150_v36, %v149_v35 }
  0xfe   :  { %477 = vmatmul.mubr.bf16.vlgmr.msra.gmra.mrb[0].mxu1 %v151_v37 }
 0x1d1   :  { %v257_v41 = vpop.f32.mrb[0].mxu1 }
 0x1d2   :  { %v258_v42 = vadd.f32 %v395_v40, %v257_v41  ;;  %v478_v43 = vpop.f32.mrb[1].mxu1 }
 0x1d3   :  { %v260_v44 = vpop.f32.mrb[2].mxu1 }
 0x1d4   :  { %v261_v45 = vadd.f32 %v395_v40, %v260_v44  ;;  %v479_v46 = vpop.f32.mrb[3].mxu1  ;;  %v264_v47 = vmax.f32 %v258_v42, 0.0 }
 0x1d6   :  { %v265_v48 = vmax.f32 %v261_v45, 0.0 }
 0x1d8   :  { %v266_v49 = vpack.c.bf16 %v265_v48, %v264_v47 }
 0x1da   :  { %497 = vmatmul.mubr.bf16.vlgmr.msra.gmra.mrb[4].mxu0 %v266_v49 }
 0x2ad   :  { %v372_v51 = vpop.f32.mrb[4].mxu0 }
 0x2ae   :  { %v373_v52 = vadd.f32 %v404_v50, %v372_v51  ;;  %v498_v53 = vpop.f32.mrb[5].mxu0 }
 0x2af   :  { %v375_v54 = vpop.f32.mrb[6].mxu0 }
 0x2b0   :  { %380 = vst.msk [vmem:[%s700_s7] sm:$0xff] %vm379_vm2, %v373_v52  ;;  %v376_v55 = vadd.f32 %v404_v50, %v375_v54  ;;  %v499_v56 = vpop.f32.mrb[7].mxu0 }
 0x2b2   :  { %381 = vst.msk [vmem:[%s700_s7 + $0x8] sm:$0xff] %vm379_vm2, %v376_v55 }

</bundles_post_ra>
